<compile_context>
chip_gen: v5e
topology: v5e:2x2
jax: 0.10.0
libtpu: 0.0.40
codegen_flags: <defaults>
</compile_context>

<pallas_src>
import functools

import jax
import jax.numpy as jnp
from jax.experimental import pallas as pl
from jax.experimental.pallas import tpu as pltpu


def _hgtd_kernel(d2, n_ref, dt_ref, flow_ref, mask_ref, gram_ref, dsrow_ref,
                 htt_ref, pred_ref, sq_ref):
    """Per node-block body.  (tile_n = node tile, KDp = padded dim2*dim3)

      n_ref    (tile_n, rank+2)       N rows augmented with [N_bias, 1]
      dt_ref   (rank+2, KDp)          [(D ⊙ T)^T ; 1 ; D_bias ⊕ T_bias]  (invariant)
      flow_ref (tile_n, KDp)          observed flow, flattened over (day, time)
      mask_ref (tile_n, KDp) int8     observation mask (~flow_missing_mask)
      gram_ref (tile_n, dim1)         rows of N N^T (precomputed in wrapper)
      dsrow_ref(1, d2*dim1)           dsum[d] repeated dim1 times (invariant)
      htt_ref  (tile_n, d2*dim1)      heter_time, node-major flattened [n, d*dim1+m]
      pred_ref (tile_n, KDp)          reconstruction + bias (lane-dense)
      sq_ref   (1, 1, 2)              per-block partial sums [loss1_sq, loss4_sq]
    """
    f32 = jnp.float32

    # ---- CP reconstruction + all rank-1 bias terms in ONE MXU matmul ----
    pred = jnp.dot(n_ref[...], dt_ref[...], preferred_element_type=f32)
    pred_ref[...] = pred                       # lane-dense store (KDp % 128 == 0)

    # ---- loss1 partial: masked sum of squared errors ----
    maskf = mask_ref[...].astype(f32)
    d1 = (pred - flow_ref[...]) * maskf
    s1 = jnp.sum(d1 * d1, axis=(0, 1), keepdims=True)          # (1, 1)

    # ---- loss4 partial, vectorized over days ----
    # heter_time[n, d*dim1+m] - dsum[d] * gram[n, m]; gram is tiled d2x along
    # lanes and ONE cross-lane reduction is done at the end (VPU-heavy, 1 XLU op).
    gram_t = jnp.tile(gram_ref[...], (1, d2))                   # (tile_n, d2*dim1)
    d4 = htt_ref[...] - dsrow_ref[...] * gram_t
    s4 = jnp.sum(d4 * d4, axis=(0, 1), keepdims=True)           # (1, 1)

    # ---- merged partial-sum output: a single tiny DMA per block ----
    sq_ref[...] = jnp.concatenate([s1, s4], axis=-1).reshape(1, 1, 2)


def _round_up(x, m):
    return -(-x // m) * m


def _vmem_plan():
    """Generation-aware (block budget, vmem_limit_bytes):
       v5e/v6e (128 MiB VMEM) -> ~48 MiB of double-buffered blocks, 100 MiB limit;
       v7x (64 MiB per TC)    -> ~25 MiB of blocks, ~54 MiB limit."""
    cap = 128 << 20
    try:
        cap = int(getattr(pltpu.get_tpu_info(), "vmem_capacity_bytes", cap))
    except Exception:
        pass
    budget = max(4 << 20, min((cap * 2) // 5, 48 << 20))
    limit = max(16 << 20, min((cap * 17) // 20, 100 << 20))
    return budget, int(limit)


def _pick_node_tile(dim1_p, dim1, d2, kd_pad, rank_aug, budget_bytes):
    """Largest multiple-of-8 node tile dividing the (padded) row count whose
    double-buffered block working set fits the budget.  Prefer >= 2 grid steps
    so v7x's two TensorCores both get work and DMA/compute can overlap."""
    kdm = d2 * dim1
    per_row = (4 * (_round_up(rank_aug, 128)        # N_aug rows (lane-padded)
                    + 2 * kd_pad                    # flow in + pred out
                    + _round_up(dim1, 128)          # gram rows
                    + _round_up(kdm, 128))          # heter_time rows (node-major)
               + 2 * kd_pad)                        # int8 mask (+ sublane-pad slack)
    fixed = 2 * 4 * (_round_up(rank_aug, 8) * kd_pad    # DT_aug (invariant, dbl-buffered)
                     + 8 * _round_up(kdm, 128))          # dsum row (invariant)
    cands = [t for t in range(8, dim1_p + 1, 8) if dim1_p % t == 0]
    fitting = [t for t in cands if fixed + 2 * t * per_row <= budget_bytes]
    if not fitting:
        return cands[0]                    # smallest legal tile; never exceed budget
    multi = [t for t in fitting if dim1_p // t >= 2]
    return max(multi) if multi else max(fitting)


def hgtd_fk_forward(N4, D4, T4, N_bias, D_bias, T_bias,
                    flow_missing, flow_missing_mask, day_index,
                    heter_spatial_unmasked, heter_time_unmasked):
    f32 = jnp.float32
    dim1, _, _, rank = N4.shape
    dim3 = T4.shape[2]
    d2 = int(day_index.shape[0])           # == dim2 (required for bias broadcast)
    kd = d2 * dim3
    kdm = d2 * dim1

    # ---- wrapper-side layout plumbing & loop-invariant precompute (XLA) ----
    N2 = N4.reshape(dim1, rank).astype(f32)                    # N.squeeze(1).squeeze(1)
    Dsel = D4[0, day_index, 0, :].astype(f32)                  # (d2, rank)
    T2 = T4.reshape(dim3, rank).astype(f32)                    # (dim3, rank)

    DT_T = (Dsel[:, None, :] * T2[None, :, :]).reshape(kd, rank).T      # (rank, kd)
    # NOTE: the reference adds D_bias (NOT D_bias[day_index]) via vec_combine,
    # so dtbias is intentionally built from D_bias directly.
    dtbias = (D_bias.astype(f32)[:, None]
              + T_bias.astype(f32)[None, :]).reshape(1, kd)             # (1, kd)
    nb = N_bias.astype(f32).reshape(dim1, 1)

    rank_aug = rank + 2                                       # biases folded into matmul
    N_aug = jnp.concatenate([N2, nb, jnp.ones((dim1, 1), f32)], axis=1)
    DT_aug = jnp.concatenate([DT_T, jnp.ones((1, kd), f32), dtbias], axis=0)

    gram = jnp.dot(N2, N2.T)                                   # (dim1, dim1), once
    dsum = jnp.sum(Dsel, axis=1)                               # (d2,)
    dsum_row = jnp.repeat(dsum, dim1).reshape(1, kdm)          # [d*dim1+m] -> dsum[d]

    flow2 = flow_missing.astype(f32).reshape(dim1, kd)
    mask2 = jnp.logical_not(flow_missing_mask).astype(jnp.int8).reshape(dim1, kd)
    # node-major heter_time: one contiguous slab per node row, [n, d*dim1 + m]
    htt2 = jnp.transpose(heter_time_unmasked.astype(f32), (0, 2, 1)).reshape(dim1, kdm)

    # ---- padding: KD lanes to a multiple of 128, node rows to a multiple of 8 ----
    kd_pad = _round_up(kd, 128)
    dim1_p = max(8, _round_up(dim1, 8))
    pc, pr = kd_pad - kd, dim1_p - dim1
    if pc:
        DT_aug = jnp.pad(DT_aug, ((0, 0), (0, pc)))
        flow2 = jnp.pad(flow2, ((0, 0), (0, pc)))
        mask2 = jnp.pad(mask2, ((0, 0), (0, pc)))
    gram_rows = gram
    if pr:
        N_aug = jnp.pad(N_aug, ((0, pr), (0, 0)))
        flow2 = jnp.pad(flow2, ((0, pr), (0, 0)))
        mask2 = jnp.pad(mask2, ((0, pr), (0, 0)))
        gram_rows = jnp.pad(gram, ((0, pr), (0, 0)))
        htt2 = jnp.pad(htt2, ((0, pr), (0, 0)))
    # (padded rows/cols carry zero mask / zero gram / zero heter_time, so they
    #  contribute exactly 0 to the loss partials and are sliced off pred.)

    budget, vmem_limit = _vmem_plan()
    tile_n = _pick_node_tile(dim1_p, dim1, d2, kd_pad, rank_aug, budget)
    grid_n = dim1_p // tile_n

    kernel = functools.partial(_hgtd_kernel, d2)

    pred_pad, sqp = pl.pallas_call(
        kernel,
        grid=(grid_n,),
        in_specs=[
            pl.BlockSpec((tile_n, rank_aug), lambda b: (b, 0)),     # N_aug rows
            pl.BlockSpec((rank_aug, kd_pad), lambda b: (0, 0)),     # DT_aug (invariant)
            pl.BlockSpec((tile_n, kd_pad), lambda b: (b, 0)),       # flow rows
            pl.BlockSpec((tile_n, kd_pad), lambda b: (b, 0)),       # mask rows (int8)
            pl.BlockSpec((tile_n, dim1), lambda b: (b, 0)),         # gram rows
            pl.BlockSpec((1, kdm), lambda b: (0, 0)),               # dsum row (invariant)
            pl.BlockSpec((tile_n, kdm), lambda b: (b, 0)),          # heter_time rows
        ],
        out_specs=[
            pl.BlockSpec((tile_n, kd_pad), lambda b: (b, 0)),       # pred (lane-dense)
            pl.BlockSpec((1, 1, 2), lambda b: (b, 0, 0)),           # merged partials
        ],
        out_shape=[
            jax.ShapeDtypeStruct((dim1_p, kd_pad), f32),
            jax.ShapeDtypeStruct((grid_n, 1, 2), f32),
        ],
        compiler_params=pltpu.CompilerParams(
            dimension_semantics=("parallel",),
            vmem_limit_bytes=vmem_limit),
    )(N_aug, DT_aug, flow2, mask2, gram_rows, dsum_row, htt2)

    pred = pred_pad[:dim1, :kd].reshape(dim1, d2, dim3)

    loss1 = jnp.sqrt(jnp.sum(sqp[:, 0, 0]))
    # loss2 norms the *selected* D, exactly as torch.norm(D[:, day_index, :, :]).
    loss2 = 0.1 * (jnp.sqrt(jnp.sum(N2 * N2))
                   + jnp.sqrt(jnp.sum(Dsel * Dsel))
                   + jnp.sqrt(jnp.sum(T2 * T2)))
    d3 = heter_spatial_unmasked.astype(f32) - gram            # loss3 hoisted to XLA
    loss3 = 0.0001 * jnp.sqrt(jnp.sum(d3 * d3))
    loss4 = 0.0001 * jnp.sqrt(jnp.sum(sqp[:, 0, 1]))
    loss = loss1 + loss2 + loss3 + loss4
    return loss, pred


def cp_factor_sample(key, shape, mu_init=0.0, rho_init=-7.0):
    """Deterministic re-implementation of CPFactor.forward() weight sampling:
       w = mu + log1p(exp(rho)) * eps,  mu = 0.1*randn + mu_init,
       rho = 0.1*randn + rho_init."""
    # TODO(synk): log_prior / log_variational_posterior bookkeeping of the
    # Bayesian layers is a side attribute in PyTorch, not part of (loss, pred);
    # intentionally not reproduced.
    k_mu, k_rho, k_eps = jax.random.split(key, 3)
    mu = jax.random.normal(k_mu, shape, jnp.float32) * 0.1 + mu_init
    rho = jax.random.normal(k_rho, shape, jnp.float32) * 0.1 + rho_init
    sigma = jnp.log1p(jnp.exp(rho))
    eps = jax.random.normal(k_eps, shape, jnp.float32)
    return mu + sigma * eps


def _reference_forward(N4, D4, T4, N_bias, D_bias, T_bias,
                       flow_missing, flow_missing_mask, day_index,
                       heter_spatial_unmasked, heter_time_unmasked):
    """Pure-JAX (XLA) reference of the PyTorch forward, f32."""
    f32 = jnp.float32
    dim1, _, _, rank = N4.shape
    dim3 = T4.shape[2]
    N2 = N4.reshape(dim1, rank).astype(f32)
    Dsel = D4[0, day_index, 0, :].astype(f32)
    T2 = T4.reshape(dim3, rank).astype(f32)
    Y = jnp.einsum('nr,dr,tr->ndt', N2, Dsel, T2)
    bias = (N_bias.astype(f32)[:, None, None] + D_bias.astype(f32)[None, :, None]
            + T_bias.astype(f32)[None, None, :])
    pred = Y + bias
    keep = jnp.logical_not(flow_missing_mask)
    loss1 = jnp.sqrt(jnp.sum(jnp.where(keep, (pred - flow_missing) ** 2, 0.0)))
    loss2 = 0.1 * (jnp.sqrt(jnp.sum(N2 ** 2)) + jnp.sqrt(jnp.sum(Dsel ** 2))
                   + jnp.sqrt(jnp.sum(T2 ** 2)))
    gram = N2 @ N2.T
    loss3 = 0.0001 * jnp.sqrt(jnp.sum((heter_spatial_unmasked - gram) ** 2))
    rt = jnp.einsum('nm,d->nmd', gram, jnp.sum(Dsel, axis=1))
    loss4 = 0.0001 * jnp.sqrt(jnp.sum((heter_time_unmasked - rt) ** 2))
    return loss1 + loss2 + loss3 + loss4, pred


if __name__ == "__main__":
    dim1, dim2, dim3, rank = 8, 6, 16, 4

    key = jax.random.PRNGKey(0)
    ks = jax.random.split(key, 11)

    # CPFactor parameters / samples (deterministic, in-script)
    N4 = cp_factor_sample(ks[0], (dim1, 1, 1, rank))
    D4 = cp_factor_sample(ks[1], (1, dim2, 1, rank))
    T4 = cp_factor_sample(ks[2], (1, 1, dim3, rank))
    N_bias = cp_factor_sample(ks[3], (dim1,))
    D_bias = cp_factor_sample(ks[4], (dim2,))
    T_bias = cp_factor_sample(ks[5], (dim3,))

    # forward() inputs
    flow_missing = jax.random.normal(ks[6], (dim1, dim2, dim3), jnp.float32)
    flow_missing_mask = jax.random.bernoulli(ks[7], 0.3, (dim1, dim2, dim3))
    day_index = jax.random.randint(ks[8], (dim2,), 0, dim2)   # len == dim2 so pred+bias broadcasts
    heter_spatial_unmasked = jax.random.normal(ks[9], (dim1, dim1), jnp.float32)
    heter_time_unmasked = jax.random.normal(ks[10], (dim1, dim1, dim2), jnp.float32)

    loss, pred = hgtd_fk_forward(N4, D4, T4, N_bias, D_bias, T_bias,
                                 flow_missing, flow_missing_mask, day_index,
                                 heter_spatial_unmasked, heter_time_unmasked)
    jax.block_until_ready((loss, pred))

    loss_ref, pred_ref = _reference_forward(N4, D4, T4, N_bias, D_bias, T_bias,
                                            flow_missing, flow_missing_mask, day_index,
                                            heter_spatial_unmasked, heter_time_unmasked)

    assert pred.shape == (dim1, dim2, dim3)
    assert bool(jnp.isfinite(loss)) and bool(jnp.all(jnp.isfinite(pred)))
    assert bool(jnp.allclose(pred, pred_ref, rtol=2e-3, atol=2e-3))
    assert bool(jnp.allclose(loss, loss_ref, rtol=2e-3, atol=2e-3))
    print("KERNEL_OK")
</pallas_src>

<mosaic_0001>
module attributes {stable_mosaic.version = 11 : i64} {
  func.func @_hgtd_kernel(%arg0: i32, %arg1: memref<8x6xf32, #tpu.memory_space<vmem>>, %arg2: memref<6x128xf32, #tpu.memory_space<vmem>>, %arg3: memref<8x128xf32, #tpu.memory_space<vmem>>, %arg4: memref<8x128xi8, #tpu.memory_space<vmem>>, %arg5: memref<8x8xf32, #tpu.memory_space<vmem>>, %arg6: memref<1x48xf32, #tpu.memory_space<vmem>>, %arg7: memref<8x48xf32, #tpu.memory_space<vmem>>, %arg8: memref<8x128xf32, #tpu.memory_space<vmem>>, %arg9: memref<1x1x2xf32, #tpu.memory_space<vmem>>) attributes {dimension_semantics = [#tpu.dimension_semantics<parallel>], iteration_bounds = array<i64: 1>, scalar_prefetch = 0 : i64, scratch_operands = 0 : i64, tpu.core_type = #tpu.core_type<tc>, window_params = [{transform_indices = @transform_0, window_bounds = array<i64: 8, 6>}, {pipeline_mode = #tpu.pipeline_mode<synchronous>, transform_indices = @transform_1, window_bounds = array<i64: 6, 128>}, {transform_indices = @transform_2, window_bounds = array<i64: 8, 128>}, {transform_indices = @transform_3, window_bounds = array<i64: 8, 128>}, {transform_indices = @transform_4, window_bounds = array<i64: 8, 8>}, {pipeline_mode = #tpu.pipeline_mode<synchronous>, transform_indices = @transform_5, window_bounds = array<i64: 1, 48>}, {transform_indices = @transform_6, window_bounds = array<i64: 8, 48>}, {transform_indices = @transform_7, window_bounds = array<i64: 8, 128>}, {transform_indices = @transform_8, window_bounds = array<i64: 1, 1, 2>}]} {
    %c0 = arith.constant 0 : index
    %c0_0 = arith.constant 0 : index
    %0 = vector.load %arg1[%c0, %c0_0] : memref<8x6xf32, #tpu.memory_space<vmem>>, vector<8x6xf32>
    %c0_1 = arith.constant 0 : index
    %c0_2 = arith.constant 0 : index
    %1 = vector.load %arg2[%c0_1, %c0_2] : memref<6x128xf32, #tpu.memory_space<vmem>>, vector<6x128xf32>
    %cst = arith.constant dense<0.000000e+00> : vector<8x128xf32>
    %2 = tpu.matmul %0, %1, %cst {dimension_numbers = #tpu.dot_dimension_numbers<[1], [0], [0], [1], [0, 0, 1, 1], [], []>} : vector<8x6xf32>, vector<6x128xf32>, vector<8x128xf32> -> vector<8x128xf32>
    %c0_3 = arith.constant 0 : index
    %c0_4 = arith.constant 0 : index
    %3 = vector.load %arg8[%c0_3, %c0_4] : memref<8x128xf32, #tpu.memory_space<vmem>>, vector<8x128xf32>
    tpu.vector_store %arg8[%c0_3, %c0_4], %2 {strides = array<i32>} : memref<8x128xf32, #tpu.memory_space<vmem>>, vector<8x128xf32>,
    %c0_5 = arith.constant 0 : index
    %c0_6 = arith.constant 0 : index
    %4 = vector.load %arg4[%c0_5, %c0_6] : memref<8x128xi8, #tpu.memory_space<vmem>>, vector<8x128xi8>
    %5 = arith.sitofp %4 : vector<8x128xi8> to vector<8x128xf32>
    %c0_7 = arith.constant 0 : index
    %c0_8 = arith.constant 0 : index
    %6 = vector.load %arg3[%c0_7, %c0_8] : memref<8x128xf32, #tpu.memory_space<vmem>>, vector<8x128xf32>
    %7 = arith.subf %2, %6 : vector<8x128xf32>
    %8 = arith.mulf %7, %5 : vector<8x128xf32>
    %9 = arith.mulf %8, %8 : vector<8x128xf32>
    %10 = vector.shape_cast %9 : vector<8x128xf32> to vector<1x8x128xf32>
    %cst_9 = arith.constant dense<0.000000e+00> : vector<1xf32>
    %11 = vector.multi_reduction <add>, %10, %cst_9 [1, 2] : vector<1x8x128xf32> to vector<1xf32>
    %12 = vector.shape_cast %11 : vector<1xf32> to vector<1x1x1xf32>
    %13 = vector.extract %12[0, 0, 0] : f32 from vector<1x1x1xf32>
    %14 = vector.broadcast %13 : f32 to vector<1x1xf32>
    %c0_10 = arith.constant 0 : index
    %c0_11 = arith.constant 0 : index
    %15 = vector.load %arg5[%c0_10, %c0_11] : memref<8x8xf32, #tpu.memory_space<vmem>>, vector<8x8xf32>
    %16 = tpu.concatenate %15, %15, %15, %15, %15, %15 in 1 : vector<8x8xf32>, vector<8x8xf32>, vector<8x8xf32>, vector<8x8xf32>, vector<8x8xf32>, vector<8x8xf32> -> vector<8x48xf32>
    %c0_12 = arith.constant 0 : index
    %c0_13 = arith.constant 0 : index
    %17 = vector.load %arg7[%c0_12, %c0_13] : memref<8x48xf32, #tpu.memory_space<vmem>>, vector<8x48xf32>
    %c0_14 = arith.constant 0 : index
    %c0_15 = arith.constant 0 : index
    %18 = vector.load %arg6[%c0_14, %c0_15] : memref<1x48xf32, #tpu.memory_space<vmem>>, vector<1x48xf32>
    %19 = vector.broadcast %18 : vector<1x48xf32> to vector<8x48xf32>
    %20 = arith.mulf %19, %16 : vector<8x48xf32>
    %21 = arith.subf %17, %20 : vector<8x48xf32>
    %22 = arith.mulf %21, %21 : vector<8x48xf32>
    %23 = vector.shape_cast %22 : vector<8x48xf32> to vector<1x8x48xf32>
    %cst_16 = arith.constant dense<0.000000e+00> : vector<1xf32>
    %24 = vector.multi_reduction <add>, %23, %cst_16 [1, 2] : vector<1x8x48xf32> to vector<1xf32>
    %25 = vector.shape_cast %24 : vector<1xf32> to vector<1x1x1xf32>
    %26 = vector.extract %25[0, 0, 0] : f32 from vector<1x1x1xf32>
    %27 = vector.broadcast %26 : f32 to vector<1x1xf32>
    %28 = tpu.concatenate %14, %27 in 1 : vector<1x1xf32>, vector<1x1xf32> -> vector<1x2xf32>
    %29 = vector.shape_cast %28 : vector<1x2xf32> to vector<1x1x2xf32>
    %c0_17 = arith.constant 0 : index
    %c0_18 = arith.constant 0 : index
    %c0_19 = arith.constant 0 : index
    %30 = vector.load %arg9[%c0_17, %c0_18, %c0_19] : memref<1x1x2xf32, #tpu.memory_space<vmem>>, vector<1x1x2xf32>
    tpu.vector_store %arg9[%c0_17, %c0_18, %c0_19], %29 {strides = array<i32>} : memref<1x1x2xf32, #tpu.memory_space<vmem>>, vector<1x1x2xf32>,
    return
  }
  func.func @transform_0(%arg0: i32) -> (i32, i32) {
    %c0_i32 = arith.constant 0 : i32
    %c0_i32_0 = arith.constant 0 : i32
    return %arg0, %c0_i32 : i32, i32
  }
  func.func @transform_1(%arg0: i32) -> (i32, i32) {
    %c0_i32 = arith.constant 0 : i32
    %c0_i32_0 = arith.constant 0 : i32
    %c0_i32_1 = arith.constant 0 : i32
    return %c0_i32, %c0_i32_0 : i32, i32
  }
  func.func @transform_2(%arg0: i32) -> (i32, i32) {
    %c0_i32 = arith.constant 0 : i32
    %c0_i32_0 = arith.constant 0 : i32
    return %arg0, %c0_i32 : i32, i32
  }
  func.func @transform_3(%arg0: i32) -> (i32, i32) {
    %c0_i32 = arith.constant 0 : i32
    %c0_i32_0 = arith.constant 0 : i32
    return %arg0, %c0_i32 : i32, i32
  }
  func.func @transform_4(%arg0: i32) -> (i32, i32) {
    %c0_i32 = arith.constant 0 : i32
    %c0_i32_0 = arith.constant 0 : i32
    return %arg0, %c0_i32 : i32, i32
  }
  func.func @transform_5(%arg0: i32) -> (i32, i32) {
    %c0_i32 = arith.constant 0 : i32
    %c0_i32_0 = arith.constant 0 : i32
    %c0_i32_1 = arith.constant 0 : i32
    return %c0_i32, %c0_i32_0 : i32, i32
  }
  func.func @transform_6(%arg0: i32) -> (i32, i32) {
    %c0_i32 = arith.constant 0 : i32
    %c0_i32_0 = arith.constant 0 : i32
    return %arg0, %c0_i32 : i32, i32
  }
  func.func @transform_7(%arg0: i32) -> (i32, i32) {
    %c0_i32 = arith.constant 0 : i32
    %c0_i32_0 = arith.constant 0 : i32
    return %arg0, %c0_i32 : i32, i32
  }
  func.func @transform_8(%arg0: i32) -> (i32, i32, i32) {
    %c0_i32 = arith.constant 0 : i32
    %c0_i32_0 = arith.constant 0 : i32
    %c0_i32_1 = arith.constant 0 : i32
    return %arg0, %c0_i32, %c0_i32_0 : i32, i32, i32
  }
}

</mosaic_0001>

<bundles_post_ra>
// kernel: tpu_custom_call.1
= control target key start
LH: loop header
LB: loop body
LE: loop exit
PB: predicated region body
PF: predicated region fallthrough
CT: control target
= control target key end

     0   :  { %14 = vsyncpa [#allocation3], 0  ;;  %s513_s0 = inlined_call_operand.hbm [shape: f32[8,6], index: 0, kind: input, shape index: {}]   ;;  %s514_s1 = inlined_call_operand.hbm [shape: f32[6,128], index: 1, kind: input, shape index: {}]   ;;  %s515_s2 = inlined_call_operand.hbm [shape: f32[8,128], index: 2, kind: input, shape index: {}]   ;;  %s516_s3 = inlined_call_operand.vmem [shape: s8[8,128], index: 3, kind: input, shape index: {}]   ;;  %s517_s4 = inlined_call_operand.hbm [shape: f32[8,8], index: 4, kind: input, shape index: {}]   ;;  %s518_s5 = inlined_call_operand.vmem [shape: f32[1,48], index: 5, kind: input, shape index: {}]   ;;  %s519_s6 = inlined_call_operand.hbm [shape: f32[8,48], index: 6, kind: input, shape index: {}]   ;;  %s520_s7 = inlined_call_operand.hbm [shape: f32[8,128], index: 7, kind: output, shape index: {0}]   ;;  %s521_s8 = inlined_call_operand.hbm [shape: f32[1,1,2], index: 8, kind: output, shape index: {1}]  }
   0x1   :  { %15 = vsyncpa [#allocation6], 0 }
   0x2   :  { %16 = vsyncpa [#allocation9], 0 }
   0x3   :  { %17 = vsyncpa [#allocation4], 0  ;;  %s35_s29 = sshll.u32 %s514_s1, 4  ;;  %s36_s29 = int_to_ptr.hbm [resolvable:$true] %s35_s29 }
   0x4   :  { %18 = vsyncpa [#allocation13], 0  ;;  %s429_s30 = smov [#allocation5]   ;;  %s59_s12 = sshll.u32 %s517_s4, 4  ;;  %s60_s12 = int_to_ptr.hbm [resolvable:$true] %s59_s12 }
   0x5   :  { %s37_s9 = sshll.u32 %s429_s30, 4  ;;  %s430_s13 = smov [#allocation8]   ;;  %s38_s9 = int_to_ptr.vmem [resolvable:$true] %s37_s9 }
   0x6   :  { %40 = dma.hbm_to_vmem [thread:$0]  %s36_s29, 128, %s38_s9, [#allocation6]  }
   0x7   :  { %s61_s14 = sshll.u32 %s430_s13, 4  ;;  %s24_s17 = sshll.u32 %s513_s0, 4  ;;  %s62_s14 = int_to_ptr.vmem [resolvable:$true] %s61_s14  ;;  %s25_s17 = int_to_ptr.hbm [resolvable:$true] %s24_s17 }
   0x8   :  { %64 = dma.hbm_to_vmem [thread:$0]  %s60_s12, 128, %s62_s14, [#allocation9]  }
   0x9   :  { %s46_s19 = sshll.u32 %s515_s2, 4  ;;  %s431_s20 = smov [#allocation2]   ;;  %s47_s19 = int_to_ptr.hbm [resolvable:$true] %s46_s19 }
   0xa   :  { %s26_s21 = sshll.u32 %s431_s20, 4  ;;  %s432_s4 = smov [#allocation7]   ;;  %s27_s21 = int_to_ptr.vmem [resolvable:$true] %s26_s21 }
   0xb   :  { %29 = dma.hbm_to_vmem [thread:$0]  %s25_s17, 128, %s27_s21, [#allocation3]  }
   0xc   :  { %s48_s22 = sshll.u32 %s432_s4, 4  ;;  %s72_s25 = sshll.u32 %s519_s6, 4  ;;  %s49_s22 = int_to_ptr.vmem [resolvable:$true] %s48_s22  ;;  %s73_s25 = int_to_ptr.hbm [resolvable:$true] %s72_s25 }
   0xd   :  { %51 = dma.hbm_to_vmem [thread:$0]  %s47_s19, 128, %s49_s22, [#allocation6]  }
   0xe   :  { %s433_s0 = smov [#allocation10]  }
   0xf   :  { %s74_s26 = sshll.u32 %s433_s0, 4  ;;  %s75_s26 = int_to_ptr.vmem [resolvable:$true] %s74_s26 }
  0x10   :  { %77 = dma.hbm_to_vmem [thread:$0]  %s73_s25, 128, %s75_s26, [#allocation9]  }
  0x11   :  { %419 = dma.done.wait [#allocation3], 128  }
  0x12   :  { %420 = vsyncadd [#allocation3], 4294967168 }
  0x13   :  { %421 = dma.done.wait [#allocation6], 256  }
  0x14   :  { %422 = vsyncadd [#allocation6], 4294967040 }
  0x15   :  { %423 = dma.done.wait [#allocation9], 256  }
  0x16   :  { %424 = vsyncadd [#allocation9], 4294967040  ;;  %vm104_vm0 = vcmask 1045504   ;;  %vm100_vm1 = vcmask 48128   ;;  %v146_v0 = vld [vmem:[#allocation8] sm:$0xff]  ;;  %v98_v2 = vld [vmem:[#allocation2] sm:$0xff] }
  0x17   :  { %v99_v1 = vld [vmem:[#allocation5] sm:$0x3f]  ;;  %s434_s2 = smov 8   ;;  %s435_s6 = smov 24   ;;  %v129_v5 = vld [vmem:[%s516_s3] sm:$0x3] }
  0x18   :  { %148 = vrot.lane.b32.xlu0 %v146_v0, %s434_s2  ;;  %232 = vmatpush.msk.msra.mxu0 %vm104_vm0, %v99_v1  ;;  %s436_s27 = smov 40   ;;  %s437_s28 = smov 16   ;;  %vm163_vm2 = vcmask 64512   ;;  %vm165_vm3 = vcmask 130048   ;;  %vm167_vm4 = vcmask 195584   ;;  %v130_v6 = vunpack.c.0.s8 %v129_v5  ;;  %v132_v14 = vld [vmem:[#allocation7] sm:$0xff] }
  0x19   :  { %233 = vmatmul.msk.f32.vlgmr.msra.gmra.mxu0 %vm100_vm1, %v98_v2  ;;  %154 = vrot.lane.b32.xlu1 %v146_v0, %s435_s6  ;;  %s438_s29 = smov 32   ;;  %vm169_vm5 = vcmask 261120   ;;  %vm171_vm6 = vcmask 326656   ;;  %v250_v11 = vld [vmem:[%s518_s5] ss:$0 sm:$0xff]  ;;  %vm181_vm7 = vcmask 392192  }
  0x1a   :  { %160 = vrot.lane.b32.xlu2 %v146_v0, %s436_s27  ;;  %v131_v16 = vcvt.s32.f32 %v130_v6  ;;  %v173_v19 = vld [vmem:[#allocation10] sm:$0xff]  ;;  %s439_s3 = smov [#allocation11]   ;;  %s204_s14 = sshll.u32 %s520_s7, 4  ;;  %vm193_vm8 = vcmask 7168   ;;  %vm195_vm9 = vcmask 8192   ;;  %s205_s14 = int_to_ptr.hbm [resolvable:$true] %s204_s14 }
  0x1b   :  { %s202_s5 = sshll.u32 %s439_s3, 4  ;;  %s440_s7 = smov [#allocation12]   ;;  %s203_s5 = int_to_ptr.vmem [resolvable:$true] %s202_s5 }
  0x1c   :  { %s213_s15 = sshll.u32 %s440_s7, 4  ;;  %s215_s1 = sshll.u32 %s521_s8, 4  ;;  %s214_s15 = int_to_ptr.vmem [resolvable:$true] %s213_s15  ;;  %s216_s1 = int_to_ptr.hbm [resolvable:$true] %s215_s1 }
  0x20   :  { %151 = vrot.lane.b32.xlu0 %v146_v0, %s437_s28 }
  0x21   :  { %157 = vrot.lane.b32.xlu1 %v146_v0, %s438_s29 }
  0x74   :  { %v161_v12 = vpop.permute.xlu2 %160 }
  0x8a   :  { %v149_v3 = vpop.permute.xlu0 %148 }
  0x8b   :  { %v155_v4 = vpop.permute.xlu1 %154  ;;  %v164_v7 = vsel %vm163_vm2, %v146_v0, %v149_v3 }
  0x92   :  { %v152_v8 = vpop.permute.xlu0 %151 }
  0x93   :  { %v166_v9 = vsel %vm165_vm3, %v164_v7, %v152_v8  ;;  %v158_v10 = vpop.permute.xlu1 %157 }
  0x94   :  { %v168_v13 = vsel %vm167_vm4, %v166_v9, %v155_v4 }
  0x95   :  { %v170_v15 = vsel %vm169_vm5, %v168_v13, %v158_v10 }
  0x96   :  { %v172_v17 = vsel %vm171_vm6, %v170_v15, %v161_v12  ;;  %v125_v18 = vpop.f32.mrf.mxu0 }
  0x97   :  { %v178_v20 = vmul.f32 %v250_v11, %v172_v17  ;;  %128 = vst [vmem:[#allocation11] sm:$0xff] %v125_v18  ;;  %v133_v21 = vsub.f32 %v125_v18, %v132_v14 }
  0x98   :  { %207 = dma.vmem_to_hbm [thread:$0]  %s203_s5, 128, %s205_s14, [#allocation4]  }
  0x99   :  { %v134_v22 = vmul.f32 %v133_v21, %v131_v16  ;;  %v179_v23 = vsub.f32 %v173_v19, %v178_v20 }
  0x9b   :  { %v135_v24 = vmul.f32 %v134_v22, %v134_v22  ;;  %v180_v25 = vmul.f32 %v179_v23, %v179_v23 }
  0x9d   :  { %136 = vadd.xlane.f32.xlu2 %v135_v24  ;;  %v182_v26 = vsel %vm181_vm7, %v180_v25, 0.0 }
  0x9e   :  { %183 = vadd.xlane.f32.xlu0 %v182_v26 }
 0x110   :  { %v137_v27 = vpop.xlane.xlu2 %136 }
 0x111   :  { %v138_v28 = vrot.slane %v137_v27, 4  ;;  %v184_v29 = vpop.xlane.xlu0 %183 }
 0x112   :  { %v185_v30 = vrot.slane %v184_v29, 4 }
 0x113   :  { %v139_v31 = vadd.f32 %v138_v28, %v137_v27 }
 0x114   :  { %v186_v32 = vadd.f32 %v185_v30, %v184_v29 }
 0x115   :  { %v140_v33 = vrot.slane %v139_v31, 2 }
 0x116   :  { %v187_v34 = vrot.slane %v186_v32, 2 }
 0x117   :  { %v141_v35 = vadd.f32 %v140_v33, %v139_v31 }
 0x118   :  { %v188_v36 = vadd.f32 %v187_v34, %v186_v32 }
 0x119   :  { %v142_v37 = vrot.slane %v141_v35, 1 }
 0x11a   :  { %v189_v38 = vrot.slane %v188_v36, 1 }
 0x11b   :  { %v143_v39 = vadd.f32 %v142_v37, %v141_v35 }
 0x11c   :  { %v190_v40 = vadd.f32 %v189_v38, %v188_v36 }
 0x11d   :  { %234 = vpush %v143_v39 }
 0x11e   :  { %236 = vpush %v190_v40 }
 0x14e   :  { %s235_s18 = spop %234 }
 0x14f   :  { %v145_v41 = vstv %s235_s18  ;;  %s237_s19 = spop %236 }
 0x150   :  { %v192_v42 = vstv %s237_s19 }
 0x151   :  { %v194_v43 = vsel %vm193_vm8, %v145_v41, %v192_v42 }
 0x152   :  { %196 = vst.msk [vmem:[#allocation12] sm:$0x1] %vm195_vm9, %v194_v43 }
 0x153   :  { %218 = dma.vmem_to_hbm [thread:$0]  %s214_s15, 16, %s216_s1, [#allocation13]  }
 0x154   :  { %425 = dma.done.wait [#allocation4], 128  }
 0x155   :  { %426 = vsyncadd [#allocation4], 4294967168 }
 0x156   :  { %427 = dma.done.wait [#allocation13], 16  }
 0x157   :  { %428 = vsyncadd [#allocation13], 4294967280 }
 0x158   :  { %227 = vsyncpa [#allocation3], 1 }
 0x159   :  { %228 = vsyncpa [#allocation6], 1 }
 0x15a   :  { %229 = vsyncpa [#allocation9], 1 }
 0x15b   :  { %230 = vsyncpa [#allocation4], 1 }
 0x15c   :  { %231 = vsyncpa [#allocation13], 1 }

</bundles_post_ra>
